<compile_context>
chip_gen: v7x
topology: tpu7x:2x2x1
jax: 0.10.0
libtpu: 0.0.40
codegen_flags: <defaults>
</compile_context>

<pallas_src>
import functools

import jax
import jax.numpy as jnp
from jax.experimental import pallas as pl
from jax.experimental.pallas import tpu as pltpu


def _cdiv(a, b):
    return -(-a // b)


def _round_up(x, m):
    return ((x + m - 1) // m) * m


def _vmem_capacity_bytes():
    try:
        return int(pltpu.get_tpu_info().vmem_capacity_bytes)
    except Exception:
        return 64 * 1024 * 1024  # conservative fallback (v7x physical VMEM)


def _choose_block_edges(n_edges, d_node, out_dim, itemsize, requested=None):
    """Edge-tile size from a per-chip VMEM byte budget.

    Targets a few MiB of per-step block bytes (double-buffered in/out blocks)
    so DMA time dominates the ~0.35 us/step grid overhead, capped so the grid
    keeps >= 2 'parallel' tiles (v7x's 2 TensorCores) when E allows it.
    Returned value is a multiple of 128 (lane-aligned types block, and a
    sublane multiple for f32/bf16/int8 feature blocks alike).
    """
    if requested is not None:
        return max(128, _round_up(requested, 128))
    # double-buffered src + dst + out blocks, plus the (1, be) types block.
    per_edge = 2 * itemsize * (2 * d_node + out_dim) + 2 * 4
    budget = max(1 << 20, min(_vmem_capacity_bytes() // 16, 4 * 1024 * 1024))
    be = min(budget // per_edge, 2048)
    be = min(be, _round_up(max(_cdiv(n_edges, 2), 1), 128))  # >= 2 tiles on v7x
    return max(128, (be // 128) * 128)


def _u_op_v_kernel(types_ref, src_ref, dst_ref, emb_ref, out_ref,
                   *, num_rels, d_node, d_rel):
    block = src_ref.shape[0]

    # Vectorized embedding gather.  Types live on the lane axis: (1, be).
    # The one-hot is (R, be) -- a handful of vregs even for be in the
    # thousands -- and the gather is onehot^T @ table on the MXU
    # (transposed-LHS contraction), accumulated in f32.
    types = types_ref[...]                                                # (1, B) i32
    rel_ids = jax.lax.broadcasted_iota(jnp.int32, (num_rels, block), 0)   # (R, B)
    onehot = (types == rel_ids).astype(emb_ref.dtype)                     # (R, B)
    emb_rows = jax.lax.dot_general(
        onehot, emb_ref[...],
        dimension_numbers=(((0,), (0,)), ((), ())),
        preferred_element_type=jnp.float32)                               # (B, Dr)

    # Three full-height segment stores -> concat along dim 1.  With D and Dr
    # multiples of 128 (production dims) the column offsets 0, D, 2D are
    # lane-tile aligned and these become unmasked, fully lane-dense stores.
    out_ref[:, 0:d_node] = src_ref[...].astype(out_ref.dtype)
    out_ref[:, d_node:2 * d_node] = dst_ref[...].astype(out_ref.dtype)
    out_ref[:, 2 * d_node:2 * d_node + d_rel] = emb_rows.astype(out_ref.dtype)


def softmix_u_op_v(src_intra, dst_intra, edge_type, rel_emb_weight,
                   *, block_edges=None):
    """Pallas implementation of the u_op_v edge function.

    src_intra:      (E, D)  float -- edges.src['intra']
    dst_intra:      (E, D)  float -- edges.dst['intra']
    edge_type:      (E,)    int   -- edges.data['type']
    rel_emb_weight: (R, Dr) float -- nn.Embedding(num_rels, rel_emb_dim).weight
    returns:        (E, 2*D + Dr) -- 'intra_score'
    """
    E, D = src_intra.shape
    R, Dr = rel_emb_weight.shape
    out_dim = 2 * D + Dr
    itemsize = jnp.dtype(src_intra.dtype).itemsize

    be = _choose_block_edges(E, D, out_dim, itemsize, block_edges)

    pad_rows = 0
    if E < be:
        # Tiny edge count (< one tile): shrink the tile to the (8-rounded) edge
        # count and pad the few tail rows so every block exactly matches its
        # array.  Only taken for E < ~128, where the copies are negligible.
        be = _round_up(max(E, 8), 8)
        pad_rows = be - E
        if pad_rows:
            src_intra = jnp.pad(src_intra, ((0, pad_rows), (0, 0)))
            dst_intra = jnp.pad(dst_intra, ((0, pad_rows), (0, 0)))

    e_rows = E + pad_rows
    num_tiles = _cdiv(e_rows, be)

    # Only the tiny int32 type vector is padded to a whole number of tiles.
    types_len = num_tiles * be
    types2d = jnp.pad(edge_type.astype(jnp.int32).reshape(1, E),
                      ((0, 0), (0, types_len - E)))

    kernel = functools.partial(_u_op_v_kernel,
                               num_rels=R, d_node=D, d_rel=Dr)

    cost = pl.CostEstimate(
        flops=2 * E * R * Dr,
        transcendentals=0,
        bytes_accessed=itemsize * (E * (2 * D + out_dim) + R * Dr) + 4 * E,
    )

    compiler_params = pltpu.CompilerParams(
        dimension_semantics=("parallel",),
        vmem_limit_bytes=int(min(_vmem_capacity_bytes() // 2,
                                 64 * 1024 * 1024)),
    )

    out = pl.pallas_call(
        kernel,
        out_shape=jax.ShapeDtypeStruct((e_rows, out_dim), src_intra.dtype),
        grid_spec=pltpu.PrefetchScalarGridSpec(
            num_scalar_prefetch=0,
            grid=(num_tiles,),
            in_specs=[
                pl.BlockSpec((1, be), lambda i: (0, i)),    # edge types (lanes)
                pl.BlockSpec((be, D), lambda i: (i, 0)),    # src features
                pl.BlockSpec((be, D), lambda i: (i, 0)),    # dst features
                pl.BlockSpec((R, Dr), lambda i: (0, 0)),    # relation table
            ],
            out_specs=pl.BlockSpec((be, out_dim), lambda i: (i, 0)),
        ),
        compiler_params=compiler_params,
        cost_estimate=cost,
    )(types2d, src_intra, dst_intra, rel_emb_weight)

    return out[:E] if pad_rows else out


if __name__ == "__main__":
    key = jax.random.PRNGKey(0)

    # ---- Case 1: small shapes consistent with the module (single tile) ----
    num_rels, rel_emb_dim = 4, 32
    E, D = 16, 32

    k_emb, k_src, k_dst, k_typ, key = jax.random.split(key, 5)
    rel_emb_weight = jax.random.normal(k_emb, (num_rels, rel_emb_dim), jnp.float32)
    src_intra = jax.random.normal(k_src, (E, D), jnp.float32)
    dst_intra = jax.random.normal(k_dst, (E, D), jnp.float32)
    edge_type = jax.random.randint(k_typ, (E,), 0, num_rels, jnp.int32)

    out = softmix_u_op_v(src_intra, dst_intra, edge_type, rel_emb_weight)
    out = jax.block_until_ready(out)

    ref = jnp.concatenate(
        [src_intra, dst_intra, rel_emb_weight[edge_type]], axis=1)
    assert out.shape == (E, 2 * D + rel_emb_dim)
    assert jnp.allclose(out, ref, atol=1e-6, rtol=1e-6)

    # ---- Case 2: ragged edge count (multi-tile grid, unpadded features) ----
    num_rels2, rel_emb_dim2 = 5, 32
    E2, D2 = 1000, 32

    k_emb2, k_src2, k_dst2, k_typ2, key = jax.random.split(key, 5)
    rel_emb_weight2 = jax.random.normal(k_emb2, (num_rels2, rel_emb_dim2), jnp.float32)
    src2 = jax.random.normal(k_src2, (E2, D2), jnp.float32)
    dst2 = jax.random.normal(k_dst2, (E2, D2), jnp.float32)
    typ2 = jax.random.randint(k_typ2, (E2,), 0, num_rels2, jnp.int32)

    out2 = softmix_u_op_v(src2, dst2, typ2, rel_emb_weight2)
    out2 = jax.block_until_ready(out2)

    ref2 = jnp.concatenate([src2, dst2, rel_emb_weight2[typ2]], axis=1)
    assert out2.shape == (E2, 2 * D2 + rel_emb_dim2)
    assert jnp.allclose(out2, ref2, atol=1e-6, rtol=1e-6)

    print("KERNEL_OK")
</pallas_src>

<mosaic_0001>
module attributes {stable_mosaic.version = 11 : i64} {
  func.func @_u_op_v_kernel(%arg0: i32, %arg1: memref<1x16xi32, #tpu.memory_space<vmem>>, %arg2: memref<16x32xf32, #tpu.memory_space<vmem>>, %arg3: memref<16x32xf32, #tpu.memory_space<vmem>>, %arg4: memref<4x32xf32, #tpu.memory_space<vmem>>, %arg5: memref<16x96xf32, #tpu.memory_space<vmem>>) attributes {dimension_semantics = [#tpu.dimension_semantics<parallel>], iteration_bounds = array<i64: 1>, scalar_prefetch = 0 : i64, scratch_operands = 0 : i64, tpu.core_type = #tpu.core_type<tc>, window_params = [{transform_indices = @transform_0, window_bounds = array<i64: 1, 16>}, {transform_indices = @transform_1, window_bounds = array<i64: 16, 32>}, {transform_indices = @transform_2, window_bounds = array<i64: 16, 32>}, {pipeline_mode = #tpu.pipeline_mode<synchronous>, transform_indices = @transform_3, window_bounds = array<i64: 4, 32>}, {transform_indices = @transform_4, window_bounds = array<i64: 16, 96>}]} {
    %c0 = arith.constant 0 : index
    %c0_0 = arith.constant 0 : index
    %0 = vector.load %arg1[%c0, %c0_0] : memref<1x16xi32, #tpu.memory_space<vmem>>, vector<1x16xi32>
    %1 = tpu.iota {dimensions = array<i32: 0>} : vector<4x16xi32>
    %2 = vector.broadcast %0 : vector<1x16xi32> to vector<4x16xi32>
    %3 = arith.cmpi eq, %2, %1 : vector<4x16xi32>
    %4 = arith.extui %3 : vector<4x16xi1> to vector<4x16xi32>
    %5 = arith.sitofp %4 : vector<4x16xi32> to vector<4x16xf32>
    %c0_1 = arith.constant 0 : index
    %c0_2 = arith.constant 0 : index
    %6 = vector.load %arg4[%c0_1, %c0_2] : memref<4x32xf32, #tpu.memory_space<vmem>>, vector<4x32xf32>
    %cst = arith.constant dense<0.000000e+00> : vector<16x32xf32>
    %7 = tpu.matmul %5, %6, %cst {dimension_numbers = #tpu.dot_dimension_numbers<[0], [0], [1], [1], [0, 1, 1, 1], [], []>} : vector<4x16xf32>, vector<4x32xf32>, vector<16x32xf32> -> vector<16x32xf32>
    %c0_3 = arith.constant 0 : index
    %c0_4 = arith.constant 0 : index
    %8 = vector.load %arg2[%c0_3, %c0_4] : memref<16x32xf32, #tpu.memory_space<vmem>>, vector<16x32xf32>
    %c0_5 = arith.constant 0 : index
    %c0_6 = arith.constant 0 : index
    %9 = vector.load %arg5[%c0_5, %c0_6] : memref<16x96xf32, #tpu.memory_space<vmem>>, vector<16x32xf32>
    tpu.vector_store %arg5[%c0_5, %c0_6], %8 {strides = array<i32>} : memref<16x96xf32, #tpu.memory_space<vmem>>, vector<16x32xf32>,
    %c0_7 = arith.constant 0 : index
    %c0_8 = arith.constant 0 : index
    %10 = vector.load %arg3[%c0_7, %c0_8] : memref<16x32xf32, #tpu.memory_space<vmem>>, vector<16x32xf32>
    %c0_9 = arith.constant 0 : index
    %c32 = arith.constant 32 : index
    %11 = vector.load %arg5[%c0_9, %c32] : memref<16x96xf32, #tpu.memory_space<vmem>>, vector<16x32xf32>
    tpu.vector_store %arg5[%c0_9, %c32], %10 {strides = array<i32>} : memref<16x96xf32, #tpu.memory_space<vmem>>, vector<16x32xf32>,
    %c0_10 = arith.constant 0 : index
    %c64 = arith.constant 64 : index
    %12 = vector.load %arg5[%c0_10, %c64] : memref<16x96xf32, #tpu.memory_space<vmem>>, vector<16x32xf32>
    tpu.vector_store %arg5[%c0_10, %c64], %7 {strides = array<i32>} : memref<16x96xf32, #tpu.memory_space<vmem>>, vector<16x32xf32>,
    return
  }
  func.func @transform_0(%arg0: i32) -> (i32, i32) {
    %c0_i32 = arith.constant 0 : i32
    %c0_i32_0 = arith.constant 0 : i32
    return %c0_i32, %arg0 : i32, i32
  }
  func.func @transform_1(%arg0: i32) -> (i32, i32) {
    %c0_i32 = arith.constant 0 : i32
    %c0_i32_0 = arith.constant 0 : i32
    return %arg0, %c0_i32 : i32, i32
  }
  func.func @transform_2(%arg0: i32) -> (i32, i32) {
    %c0_i32 = arith.constant 0 : i32
    %c0_i32_0 = arith.constant 0 : i32
    return %arg0, %c0_i32 : i32, i32
  }
  func.func @transform_3(%arg0: i32) -> (i32, i32) {
    %c0_i32 = arith.constant 0 : i32
    %c0_i32_0 = arith.constant 0 : i32
    %c0_i32_1 = arith.constant 0 : i32
    return %c0_i32, %c0_i32_0 : i32, i32
  }
  func.func @transform_4(%arg0: i32) -> (i32, i32) {
    %c0_i32 = arith.constant 0 : i32
    %c0_i32_0 = arith.constant 0 : i32
    return %arg0, %c0_i32 : i32, i32
  }
}

</mosaic_0001>

<bundles_post_ra>
// kernel: tpu_custom_call.1
= control target key start
LH: loop header
LB: loop body
LE: loop exit
PB: predicated region body
PF: predicated region fallthrough
CT: control target
= control target key end

     0   :  { %9 = vsyncpa [#allocation3], 0  ;;  %s443_s0 = inlined_call_operand.hbm [shape: s32[1,16], index: 0, kind: input, shape index: {}]   ;;  %s444_s1 = inlined_call_operand.hbm [shape: f32[16,32], index: 1, kind: input, shape index: {}]   ;;  %s445_s2 = inlined_call_operand.hbm [shape: f32[16,32], index: 2, kind: input, shape index: {}]   ;;  %s446_s3 = inlined_call_operand.vmem [shape: f32[4,32], index: 3, kind: input, shape index: {}]   ;;  %s447_s4 = inlined_call_operand.hbm [shape: f32[16,96], index: 4, kind: output, shape index: {}]  }
   0x1   :  { %10 = vsyncpa [#allocation6], 0 }
   0x2   :  { %11 = vsyncpa [#allocation4], 0  ;;  %s349_s15 = smov [#allocation5]   ;;  %s255_s19 = scalar_lea.hbm %s444_s1, 256 }
   0x3   :  { %s27_s16 = sshll.u32 %s349_s15, 4  ;;  %p256_p0 = scmp.ne.s32.totalorder %s444_s1, %s255_s19  ;;  %s28_s16 = int_to_ptr.vmem [resolvable:$true] %s27_s16 }
   0x4   :  { %p259_p1 = scmp.lt.u32.totalorder %s255_s19, %s444_s1 }
   0x6   :  { %p261_p2 = pnand %p259_p1, %p256_p0 }
   0x8   :  { %264 = shalt.err (!%p261_p2)
}
   0x9   :  { %s265_s24 = scalar_lea.vmem %s28_s16, 256  ;;  %p270_p4 = scmp.lt.s32.totalorder %s28_s16, %s28_s16 }
   0xa   :  { %p266_p3 = scmp.ne.s32.totalorder %s28_s16, %s265_s24  ;;  %p271_p5 = scmp.lt.s32.totalorder %s265_s24, %s265_s24 }
   0xc   :  { %p272_p6 = por %p271_p5, %p270_p4 }
   0xe   :  { %p273_p7 = pnand %p272_p6, %p266_p3 }
  0x10   :  { %276 = shalt.err (!%p273_p7)
}
  0x11   :  { %s350_s25 = smov 128   ;;  %s351_s26 = smov 8  }
  0x12   :  { %33 = dma.hbm_to_vmem [thread:$0]  %s444_s1, 256, %s28_s16, [#allocation6], %s350_s25, %s350_s25, %s351_s26  }
  0x13   :  { %s352_s29 = smov [#allocation2]   ;;  %s353_s5 = smov [#allocation7]  }
  0x14   :  { %s18_s30 = sshll.u32 %s352_s29, 4  ;;  %s39_s6 = sshll.u32 %s353_s5, 4  ;;  %s19_s30 = int_to_ptr.vmem [resolvable:$true] %s18_s30  ;;  %s40_s6 = int_to_ptr.vmem [resolvable:$true] %s39_s6 }
  0x15   :  { %s277_s9 = scalar_lea.hbm %s443_s0, 16 }
  0x16   :  { %p278_p8 = scmp.ne.s32.totalorder %s443_s0, %s277_s9  ;;  %p281_p9 = scmp.lt.u32.totalorder %s277_s9, %s443_s0 }
  0x18   :  { %p283_p10 = pnand %p281_p9, %p278_p8 }
  0x1a   :  { %286 = shalt.err (!%p283_p10)
}
  0x1b   :  { %s287_s1 = scalar_lea.vmem %s19_s30, 16  ;;  %s291_s14 = scalar_lea.vmem %s19_s30, 32 }
  0x1c   :  { %p288_p11 = scmp.ne.s32.totalorder %s19_s30, %s287_s1  ;;  %p292_p12 = scmp.lt.s32.totalorder %s19_s30, %s19_s30 }
  0x1d   :  { %p293_p13 = scmp.lt.s32.totalorder %s291_s14, %s287_s1 }
  0x1f   :  { %p294_p0 = por %p293_p13, %p292_p12 }
  0x21   :  { %p295_p1 = pnand %p294_p0, %p288_p11 }
  0x23   :  { %298 = shalt.err (!%p295_p1)
}
  0x24   :  { %21 = dma.hbm_to_vmem [thread:$0]  %s443_s0, 16, %s19_s30, [#allocation3]  }
  0x25   :  { %s299_s19 = scalar_lea.hbm %s445_s2, 256 }
  0x26   :  { %p300_p2 = scmp.ne.s32.totalorder %s445_s2, %s299_s19  ;;  %p303_p3 = scmp.lt.u32.totalorder %s299_s19, %s445_s2 }
  0x28   :  { %p305_p4 = pnand %p303_p3, %p300_p2 }
  0x2a   :  { %308 = shalt.err (!%p305_p4)
}
  0x2b   :  { %s309_s24 = scalar_lea.vmem %s40_s6, 256  ;;  %p314_p6 = scmp.lt.s32.totalorder %s40_s6, %s40_s6 }
  0x2c   :  { %p310_p5 = scmp.ne.s32.totalorder %s40_s6, %s309_s24  ;;  %p315_p7 = scmp.lt.s32.totalorder %s309_s24, %s309_s24 }
  0x2e   :  { %p316_p8 = por %p315_p7, %p314_p6 }
  0x30   :  { %p317_p9 = pnand %p316_p8, %p310_p5 }
  0x32   :  { %320 = shalt.err (!%p317_p9)
}
  0x33   :  { %45 = dma.hbm_to_vmem [thread:$0]  %s445_s2, 256, %s40_s6, [#allocation6], %s350_s25, %s350_s25, %s351_s26  }
  0x34   :  { %343 = dma.done.wait [#allocation3], 16  }
  0x35   :  { %344 = vsyncadd [#allocation3], 4294967280 }
  0x36   :  { %345 = dma.done.wait [#allocation6], 512  }
  0x37   :  { %346 = vsyncadd [#allocation6], 4294966784  ;;  %v58_v0 = vlaneseq  ;;  %v233_v2 = vld [vmem:[#allocation2] ss:$0 sm:$0xff]  ;;  %v354_v3 = vmov 0.0   ;;  %vm107_vm1 = vcmask 1043456  }
  0x38   :  { %v67_v5 = vld [vmem:[%s446_s3] sm:$0xf]  ;;  %s355_s2 = smov 32   ;;  %vm100_vm2 = vcmask 31744   ;;  %vm188_vm3 = vcmask 261120   ;;  %vm201_vm4 = vcmask 523520  }
  0x39   :  { %v59_v1 = vshrl.u32 %v58_v0, 7  ;;  %241 = vmatprep.subr.msk.mxu0 %vm107_vm1, %v67_v5  ;;  %v192_v6 = vld [vmem:[#allocation7 + $0x8] sm:$0xff]  ;;  %v191_v9 = vld [vmem:[#allocation7] sm:$0xff]  ;;  %v187_v11 = vld [vmem:[#allocation5 + $0x8] sm:$0xff]  ;;  %s356_s3 = smov 64   ;;  %vm212_vm5 = vcmask 785920  }
  0x3a   :  { %242 = vmatpush3.msk.msra.mxu0 %vm107_vm1, %v67_v5  ;;  %197 = vrot.lane.b32.xlu1 %v192_v6, %s355_s2  ;;  %v186_v12 = vld [vmem:[#allocation5] sm:$0xff]  ;;  %190 = vst.msk [vmem:[#allocation8 + $0x8] sm:$0xff] %vm188_vm3, %v187_v11  ;;  %s357_s30 = smov [#allocation8]  }
  0x3b   :  { %vm64_vm0 = vcmp.eq.s32.totalorder %v233_v2, %v59_v1  ;;  %189 = vst.msk [vmem:[#allocation8] sm:$0xff] %vm188_vm3, %v186_v12  ;;  %s220_s5 = sshll.u32 %s357_s30, 4  ;;  %s221_s5 = int_to_ptr.vmem [resolvable:$true] %s220_s5 }
  0x3c   :  { %v234_v4 = vsel %vm64_vm0, 1.0, %v354_v3  ;;  %s321_s6 = scalar_lea.vmem %s221_s5, 256  ;;  %p326_p11 = scmp.lt.s32.totalorder %s221_s5, %s221_s5 }
  0x3d   :  { %68 = vxpose.xlu0.b32.start.end [1/1] (short) (narrow) %v234_v4, 16  ;;  %p322_p10 = scmp.ne.s32.totalorder %s221_s5, %s321_s6  ;;  %p327_p12 = scmp.lt.s32.totalorder %s321_s6, %s321_s6 }
  0x3f   :  { %p328_p13 = por %p327_p12, %p326_p11 }
  0x41   :  { %p329_p0 = pnand %p328_p13, %p322_p10 }
  0x6a   :  { %195 = vrot.lane.b32.xlu0 %v191_v9, %s355_s2 }
  0xac   :  { %v198_v10 = vpop.permute.xlu1 %197 }
  0xad   :  { %203 = vst.msk [vmem:[#allocation8 + $0x8] sm:$0xff] %vm201_vm4, %v198_v10 }
  0xbd   :  { %v84_v7 = vpop.trf.xlu0 }
  0xbe   :  { %243 = vmatprep.mubr.msk.f32.mxu0 %vm100_vm2, %v84_v7 }
  0xc1   :  { %v85_v8 = vpop.trf.xlu0 }
  0xc2   :  { %244 = vmatmul.mubr.msk.f32.vlgmr.msra.gmra.mrb[0].mxu0 %vm100_vm2, %v85_v8 }
  0xdc   :  { %v196_v13 = vpop.permute.xlu0 %195 }
  0xdd   :  { %202 = vst.msk [vmem:[#allocation8] sm:$0xff] %vm201_vm4, %v196_v13 }
 0x195   :  { %v245_v14 = vpop.f32.mrb[0].mxu0 }
 0x196   :  { %v177_v15 = vpop.f32.mrb[1].mxu0 }
 0x197   :  { %206 = vrot.lane.b32.xlu1 %v177_v15, %s356_s3 }
 0x19b   :  { %208 = vrot.lane.b32.xlu1 %v245_v14, %s356_s3 }
 0x209   :  { %v207_v16 = vpop.permute.xlu1 %206 }
 0x20a   :  { %213 = vst.msk [vmem:[#allocation8] sm:$0xff] %vm212_vm5, %v207_v16 }
 0x20d   :  { %v209_v17 = vpop.permute.xlu1 %208 }
 0x20e   :  { %214 = vst.msk [vmem:[#allocation8 + $0x8] sm:$0xff] %vm212_vm5, %v209_v17 }
 0x20f   :  { %332 = shalt.err (!%p329_p0)
}
 0x210   :  { %s333_s9 = scalar_lea.hbm %s447_s4, 256 }
 0x211   :  { %p334_p1 = scmp.ne.s32.totalorder %s447_s4, %s333_s9  ;;  %p337_p2 = scmp.lt.u32.totalorder %s333_s9, %s447_s4 }
 0x213   :  { %p339_p3 = pnand %p337_p2, %p334_p1 }
 0x215   :  { %342 = shalt.err (!%p339_p3)
}
 0x216   :  { %226 = dma.vmem_to_hbm [thread:$0]  %s221_s5, 256, %s447_s4, [#allocation4], %s350_s25, %s350_s25, %s351_s26  }
 0x217   :  { %347 = dma.done.wait [#allocation4], 256  }
 0x218   :  { %348 = vsyncadd [#allocation4], 4294967040 }
 0x219   :  { %230 = vsyncpa [#allocation3], 1 }
 0x21a   :  { %231 = vsyncpa [#allocation6], 1 }
 0x21b   :  { %232 = vsyncpa [#allocation4], 1 }

</bundles_post_ra>
